<compile_context>
chip_gen: v6e
topology: v6e:2x2x1
jax: 0.10.0
libtpu: 0.0.40
codegen_flags: <defaults>
</compile_context>

<pallas_src>
import functools

import jax
import jax.numpy as jnp
from jax.experimental import pallas as pl
from jax.experimental.pallas import tpu as pltpu


def _cdiv(a, b):
    return -(-a // b)


def _round_up(a, m):
    return (a + m - 1) // m * m


# ----------------------------------------------------------------------------
# Pallas kernel: tiled matmul, BN pre-folded into weights.
#   out = relu?( patches @ W_folded + bias (+ residual) )
# ----------------------------------------------------------------------------
def _fused_matmul_kernel(*refs, apply_relu, has_residual, multi_k):
    if multi_k:
        *refs, acc_ref = refs
    if has_residual:
        p_ref, w_ref, b_ref, res_ref, o_ref = refs
    else:
        p_ref, w_ref, b_ref, o_ref = refs
        res_ref = None

    def epilogue(acc):
        out = acc + b_ref[...]
        if has_residual:
            out = out + res_ref[...].astype(jnp.float32)
        if apply_relu:
            out = jnp.maximum(out, 0.0)
        o_ref[...] = out.astype(o_ref.dtype)

    if not multi_k:
        # Single full-K tile: no accumulator scratch, no init/finalize phases.
        epilogue(jnp.dot(p_ref[...], w_ref[...],
                         preferred_element_type=jnp.float32))
    else:
        k = pl.program_id(1)

        @pl.when(k == 0)
        def _():
            acc_ref[...] = jnp.zeros_like(acc_ref)

        acc_ref[...] += jnp.dot(p_ref[...], w_ref[...],
                                preferred_element_type=jnp.float32)

        @pl.when(k == pl.num_programs(1) - 1)
        def _():
            epilogue(acc_ref[...])


# Tile-planning VMEM budget (double-buffered operands + scratch): fits v7x's
# 64 MiB physical VMEM with headroom; trivially fine on v5e/v6e (128 MiB).
_VMEM_BUDGET = 40 << 20


def fused_matmul(patches, w_folded, bias, *, apply_relu, residual=None,
                 out_dtype=jnp.bfloat16):
    """out[:M,:Cout] = act((patches @ w_folded) + bias (+ residual)).

    patches: (M, K)  — bf16 (or castable); w_folded: (K, Cout) f32 (BN scale
    already folded in f32); bias: (Cout,) f32; residual: optional (M, Cout).
    Returns (M, Cout) in out_dtype (bf16 by default).
    """
    f32, bf16 = jnp.float32, jnp.bfloat16
    M, K = patches.shape
    Cout = w_folded.shape[1]
    out_bytes = jnp.dtype(out_dtype).itemsize

    # --- tiling ---------------------------------------------------------
    Ncp = _round_up(Cout, 128)                      # lane-dense output width
    tile_M = min(512, _round_up(_cdiv(M, 2), 8))    # grid_M >= 2 (v7x megacore)
    Mp = _round_up(M, tile_M)
    grid_M = Mp // tile_M

    def vmem_need(tk):
        n = 2 * tile_M * tk * 2            # patches, double-buffered, bf16
        n += 2 * tk * Ncp * 2              # weights
        n += 2 * Ncp * 4                   # bias (f32 row)
        if residual is not None:
            n += 2 * tile_M * Ncp * 2      # residual, bf16
        n += 2 * tile_M * Ncp * out_bytes  # output
        n += tile_M * Ncp * 4              # f32 accumulator scratch (worst case)
        return n

    Kp = _round_up(K, 128)
    if vmem_need(Kp) <= _VMEM_BUDGET:
        tile_K = Kp                        # one full-K tile (common case)
    else:
        q = Kp // 128
        tile_K = 128
        for d in range(q, 0, -1):          # largest 128-multiple divisor of Kp
            if q % d == 0 and vmem_need(128 * d) <= _VMEM_BUDGET:
                tile_K = 128 * d
                break
    grid_K = Kp // tile_K
    multi_k = grid_K > 1

    # --- operands (pad once; BN scale already folded in f32 by caller) ---
    p_pad = jnp.pad(patches.astype(bf16), ((0, Mp - M), (0, Kp - K)))
    w_pad = jnp.pad(w_folded.astype(bf16), ((0, Kp - K), (0, Ncp - Cout)))
    b_pad = jnp.pad(bias.reshape(1, -1).astype(f32), ((0, 0), (0, Ncp - Cout)))

    args = [p_pad, w_pad, b_pad]
    in_specs = [
        pl.BlockSpec((tile_M, tile_K), lambda i, k: (i, k)),
        pl.BlockSpec((tile_K, Ncp), lambda i, k: (k, 0)),
        pl.BlockSpec((1, Ncp), lambda i, k: (0, 0)),      # resident
    ]
    if residual is not None:
        r_pad = jnp.pad(residual.astype(bf16), ((0, Mp - M), (0, Ncp - Cout)))
        args.append(r_pad)
        in_specs.append(pl.BlockSpec((tile_M, Ncp), lambda i, k: (i, 0)))

    scratch = [pltpu.VMEM((tile_M, Ncp), f32)] if multi_k else []

    flops = 2 * Mp * Kp * Ncp
    bytes_accessed = (Mp * Kp * 2                 # patches (bf16)
                      + grid_M * Kp * Ncp * 2     # weights re-read per M tile
                      + grid_M * Ncp * 4          # bias per M tile
                      + Mp * Ncp * out_bytes)     # output
    if residual is not None:
        bytes_accessed += Mp * Ncp * 2

    vmem_limit = int(min(max(2 * vmem_need(tile_K), 32 << 20), 60 << 20))

    kernel = functools.partial(_fused_matmul_kernel, apply_relu=apply_relu,
                               has_residual=residual is not None,
                               multi_k=multi_k)
    out = pl.pallas_call(
        kernel,
        out_shape=jax.ShapeDtypeStruct((Mp, Ncp), out_dtype),
        grid_spec=pltpu.PrefetchScalarGridSpec(
            num_scalar_prefetch=0,
            grid=(grid_M, grid_K),
            in_specs=in_specs,
            out_specs=pl.BlockSpec((tile_M, Ncp), lambda i, k: (i, 0)),
            scratch_shapes=scratch,
        ),
        compiler_params=pltpu.CompilerParams(
            dimension_semantics=("parallel", "arbitrary"),
            vmem_limit_bytes=vmem_limit),
        cost_estimate=pl.CostEstimate(flops=int(flops), transcendentals=0,
                                      bytes_accessed=int(bytes_accessed)),
    )(*args)
    return out[:M, :Cout]


# ----------------------------------------------------------------------------
# Glue: im2col, BN folding, parameter construction
# ----------------------------------------------------------------------------
def im2col(x_nhwc, ksize, stride, padding):
    """x: (N,H,W,C) -> patches (N*Ho*Wo, ksize*ksize*C), plus Ho, Wo."""
    N, H, W, C = x_nhwc.shape
    xp = jnp.pad(x_nhwc, ((0, 0), (padding, padding), (padding, padding), (0, 0)))
    Ho = (H + 2 * padding - ksize) // stride + 1
    Wo = (W + 2 * padding - ksize) // stride + 1
    slabs = []
    for dh in range(ksize):
        for dw in range(ksize):
            slabs.append(
                xp[:, dh:dh + stride * Ho:stride, dw:dw + stride * Wo:stride, :])
    p = jnp.stack(slabs, axis=3)  # (N, Ho, Wo, k*k, C): tap outer, channel inner
    return p.reshape(N * Ho * Wo, ksize * ksize * C), Ho, Wo


def conv_weight_to_matrix(w_oihw):
    """PyTorch (Cout, Cin, kh, kw) -> (kh*kw*Cin, Cout), matching im2col order."""
    Cout, Cin, kh, kw = w_oihw.shape
    return jnp.transpose(w_oihw, (2, 3, 1, 0)).reshape(kh * kw * Cin, Cout)


def fold_bn(gamma, beta, mean, var, conv_bias, eps=1e-5):
    """y = gamma*(z+b_conv-mean)/sqrt(var+eps)+beta  ->  z*scale + bias."""
    scale = gamma / jnp.sqrt(var + eps)
    bias = beta + scale * (conv_bias - mean)
    return scale, bias


def make_params(key, in_channels, out_channels, stride):
    def conv_p(k, cout, cin, ks):
        k1, k2 = jax.random.split(k)
        w = 0.1 * jax.random.normal(k1, (cout, cin, ks, ks), jnp.float32)
        b = 0.1 * jax.random.normal(k2, (cout,), jnp.float32)
        return w, b

    def bn_p(k, c):
        k1, k2, k3, k4 = jax.random.split(k, 4)
        gamma = 1.0 + 0.1 * jax.random.normal(k1, (c,), jnp.float32)
        beta = 0.1 * jax.random.normal(k2, (c,), jnp.float32)
        mean = 0.1 * jax.random.normal(k3, (c,), jnp.float32)
        var = 1.0 + 0.1 * jnp.abs(jax.random.normal(k4, (c,), jnp.float32))
        return gamma, beta, mean, var

    keys = jax.random.split(key, 6)
    params = {
        "conv1": conv_p(keys[0], out_channels, in_channels, 3),
        "bn1": bn_p(keys[1], out_channels),
        "conv2": conv_p(keys[2], out_channels, out_channels, 3),
        "bn2": bn_p(keys[3], out_channels),
    }
    if stride != 1 or in_channels != out_channels:
        params["conv_s"] = conv_p(keys[4], out_channels, in_channels, 1)
        params["bn_s"] = bn_p(keys[5], out_channels)
    return params


# ----------------------------------------------------------------------------
# BasicBlock forward (Pallas): NHWC/bf16 native, two fused pallas_calls total
# ----------------------------------------------------------------------------
@functools.partial(jax.jit, static_argnums=(2,))
def basic_block_forward_nhwc(x_nhwc, params, stride):
    N, H, W, Cin = x_nhwc.shape
    Cout = params["conv1"][0].shape[0]
    x_bf16 = x_nhwc.astype(jnp.bfloat16)

    # --- conv1 (3x3, stride, pad 1) + bn1 + relu --------------------------
    p1, Ho, Wo = im2col(x_bf16, 3, stride, 1)
    s1, b1 = fold_bn(*params["bn1"], params["conv1"][1])
    w1 = conv_weight_to_matrix(params["conv1"][0]) * s1[None, :]   # f32 fold
    out1 = fused_matmul(p1, w1, b1, apply_relu=True)               # bf16
    out1_img = out1.reshape(N, Ho, Wo, Cout)

    # --- conv2 (3x3, s=1, pad 1) + bn2 + shortcut + relu -------------------
    p2, _, _ = im2col(out1_img, 3, 1, 1)
    s2, b2 = fold_bn(*params["bn2"], params["conv2"][1])
    w2 = conv_weight_to_matrix(params["conv2"][0]) * s2[None, :]

    if "conv_s" in params:
        # 1x1 stride-s projection shortcut, fused into the SAME matmul by
        # concatenating its strided-sample columns along K.
        ss, bs = fold_bn(*params["bn_s"], params["conv_s"][1])
        ws = conv_weight_to_matrix(params["conv_s"][0]) * ss[None, :]
        ps = x_bf16[:, ::stride, ::stride, :].reshape(N * Ho * Wo, Cin)
        p_full = jnp.concatenate([p2, ps], axis=1)
        w_full = jnp.concatenate([w2, ws], axis=0)
        out2 = fused_matmul(p_full, w_full, b2 + bs, apply_relu=True)
    else:
        # Identity shortcut: stream x as a bf16 residual into the epilogue.
        residual = x_bf16.reshape(N * Ho * Wo, Cout)
        out2 = fused_matmul(p2, w2, b2, apply_relu=True, residual=residual)

    return out2.reshape(N, Ho, Wo, Cout)   # bf16 NHWC (inter-block format)


def basic_block_forward(x_nchw, params, stride):
    """NCHW wrapper matching the PyTorch module's layout."""
    x_nhwc = jnp.transpose(x_nchw, (0, 2, 3, 1))
    out = basic_block_forward_nhwc(x_nhwc, params, stride)
    return jnp.transpose(out.astype(jnp.float32), (0, 3, 1, 2))


# ----------------------------------------------------------------------------
# Pure-JAX reference (inference-mode BN).  Conv inputs/weights rounded to bf16
# (as the kernel does; f32 accumulation) so the tolerance can stay reasonable.
# ----------------------------------------------------------------------------
def _conv_ref(x_nhwc, w_oihw, b, stride, padding):
    w_hwio = jnp.transpose(w_oihw, (2, 3, 1, 0))
    y = jax.lax.conv_general_dilated(
        x_nhwc, w_hwio, window_strides=(stride, stride),
        padding=((padding, padding), (padding, padding)),
        dimension_numbers=("NHWC", "HWIO", "NHWC"),
        preferred_element_type=jnp.float32)
    return y + b.reshape(1, 1, 1, -1)


def _bn_ref(y, gamma, beta, mean, var, eps=1e-5):
    return (y - mean) / jnp.sqrt(var + eps) * gamma + beta


def basic_block_reference(x_nchw, params, stride):
    q = lambda t: t.astype(jnp.bfloat16).astype(jnp.float32)
    x = jnp.transpose(x_nchw, (0, 2, 3, 1)).astype(jnp.float32)
    out = _conv_ref(q(x), q(params["conv1"][0]), params["conv1"][1], stride, 1)
    out = jax.nn.relu(_bn_ref(out, *params["bn1"]))
    out = _conv_ref(q(out), q(params["conv2"][0]), params["conv2"][1], 1, 1)
    out = _bn_ref(out, *params["bn2"])
    if "conv_s" in params:
        sc = _conv_ref(q(x), q(params["conv_s"][0]), params["conv_s"][1],
                       stride, 0)
        sc = _bn_ref(sc, *params["bn_s"])
    else:
        sc = x
    out = jax.nn.relu(out + sc)
    return jnp.transpose(out, (0, 3, 1, 2))


# ----------------------------------------------------------------------------
if __name__ == "__main__":
    key = jax.random.PRNGKey(0)
    k_x, k_p1, k_p2 = jax.random.split(key, 3)

    N, Cin, H, W = 2, 4, 16, 16
    Cout, stride = 8, 2
    x = jax.random.normal(k_x, (N, Cin, H, W), jnp.float32)
    # Block A: projection shortcut (stride 2, channel change).
    params_a = make_params(k_p1, Cin, Cout, stride)
    # Block B: identity shortcut (stride 1, same channels).
    params_b = make_params(k_p2, Cout, Cout, 1)

    # Chain the two blocks keeping NHWC/bf16 as the inter-block format.
    x_nhwc = jnp.transpose(x, (0, 2, 3, 1)).astype(jnp.bfloat16)
    out_a_nhwc = basic_block_forward_nhwc(x_nhwc, params_a, stride)
    out_b_nhwc = basic_block_forward_nhwc(out_a_nhwc, params_b, 1)
    jax.block_until_ready((out_a_nhwc, out_b_nhwc))

    out_a = jnp.transpose(out_a_nhwc.astype(jnp.float32), (0, 3, 1, 2))
    out_b = jnp.transpose(out_b_nhwc.astype(jnp.float32), (0, 3, 1, 2))

    ref_a = basic_block_reference(x, params_a, stride)
    ref_b = basic_block_reference(out_a, params_b, 1)
    jax.block_until_ready((ref_a, ref_b))

    assert out_a.shape == (N, Cout, H // stride, W // stride), out_a.shape
    assert out_b.shape == out_a.shape, out_b.shape
    # bf16 matmul inputs, folded bf16 weights and bf16 outputs (f32 accumulate)
    # -> tolerance looser than a pure-f32 pipeline.
    err_a = float(jnp.max(jnp.abs(out_a - ref_a)))
    err_b = float(jnp.max(jnp.abs(out_b - ref_b)))
    assert err_a < 7e-2, err_a
    assert err_b < 7e-2, err_b

    print("KERNEL_OK")
</pallas_src>

<mosaic_0001>
module attributes {stable_mosaic.version = 11 : i64} {
  func.func @_fused_matmul_kernel(%arg0: i32, %arg1: i32, %arg2: memref<64x128xbf16, #tpu.memory_space<vmem>>, %arg3: memref<128x128xbf16, #tpu.memory_space<vmem>>, %arg4: memref<1x128xf32, #tpu.memory_space<vmem>>, %arg5: memref<64x128xbf16, #tpu.memory_space<vmem>>) attributes {dimension_semantics = [#tpu.dimension_semantics<parallel>, #tpu.dimension_semantics<arbitrary>], iteration_bounds = array<i64: 2, 1>, scalar_prefetch = 0 : i64, scratch_operands = 0 : i64, tpu.core_type = #tpu.core_type<tc>, window_params = [{transform_indices = @transform_0, window_bounds = array<i64: 64, 128>}, {transform_indices = @transform_1, window_bounds = array<i64: 128, 128>}, {pipeline_mode = #tpu.pipeline_mode<synchronous>, transform_indices = @transform_2, window_bounds = array<i64: 1, 128>}, {transform_indices = @transform_3, window_bounds = array<i64: 64, 128>}]} {
    %c0 = arith.constant 0 : index
    %c0_0 = arith.constant 0 : index
    %0 = vector.load %arg2[%c0, %c0_0] : memref<64x128xbf16, #tpu.memory_space<vmem>>, vector<64x128xbf16>
    %c0_1 = arith.constant 0 : index
    %c0_2 = arith.constant 0 : index
    %1 = vector.load %arg3[%c0_1, %c0_2] : memref<128x128xbf16, #tpu.memory_space<vmem>>, vector<128x128xbf16>
    %cst = arith.constant dense<0.000000e+00> : vector<64x128xf32>
    %2 = tpu.matmul %0, %1, %cst {dimension_numbers = #tpu.dot_dimension_numbers<[1], [0], [0], [1], [0, 0, 1, 1], [], []>} : vector<64x128xbf16>, vector<128x128xbf16>, vector<64x128xf32> -> vector<64x128xf32>
    %c0_3 = arith.constant 0 : index
    %c0_4 = arith.constant 0 : index
    %3 = vector.load %arg4[%c0_3, %c0_4] : memref<1x128xf32, #tpu.memory_space<vmem>>, vector<1x128xf32>
    %4 = vector.broadcast %3 : vector<1x128xf32> to vector<64x128xf32>
    %5 = arith.addf %2, %4 : vector<64x128xf32>
    %cst_5 = arith.constant 0.000000e+00 : f32
    %6 = vector.broadcast %cst_5 : f32 to vector<64x128xf32>
    %7 = arith.maximumf %5, %6 : vector<64x128xf32>
    %8 = arith.truncf %7 : vector<64x128xf32> to vector<64x128xbf16>
    %c0_6 = arith.constant 0 : index
    %c0_7 = arith.constant 0 : index
    %9 = vector.load %arg5[%c0_6, %c0_7] : memref<64x128xbf16, #tpu.memory_space<vmem>>, vector<64x128xbf16>
    tpu.vector_store %arg5[%c0_6, %c0_7], %8 {strides = array<i32>} : memref<64x128xbf16, #tpu.memory_space<vmem>>, vector<64x128xbf16>,
    return
  }
  func.func @transform_0(%arg0: i32, %arg1: i32) -> (i32, i32) {
    %c0_i32 = arith.constant 0 : i32
    return %arg0, %arg1 : i32, i32
  }
  func.func @transform_1(%arg0: i32, %arg1: i32) -> (i32, i32) {
    %c0_i32 = arith.constant 0 : i32
    %c0_i32_0 = arith.constant 0 : i32
    return %arg1, %c0_i32 : i32, i32
  }
  func.func @transform_2(%arg0: i32, %arg1: i32) -> (i32, i32) {
    %c0_i32 = arith.constant 0 : i32
    %c0_i32_0 = arith.constant 0 : i32
    %c0_i32_1 = arith.constant 0 : i32
    return %c0_i32, %c0_i32_0 : i32, i32
  }
  func.func @transform_3(%arg0: i32, %arg1: i32) -> (i32, i32) {
    %c0_i32 = arith.constant 0 : i32
    %c0_i32_0 = arith.constant 0 : i32
    return %arg0, %c0_i32 : i32, i32
  }
}

module attributes {stable_mosaic.version = 11 : i64} {
  func.func @_fused_matmul_kernel(%arg0: i32, %arg1: i32, %arg2: memref<64x128xbf16, #tpu.memory_space<vmem>>, %arg3: memref<128x128xbf16, #tpu.memory_space<vmem>>, %arg4: memref<1x128xf32, #tpu.memory_space<vmem>>, %arg5: memref<64x128xbf16, #tpu.memory_space<vmem>>) attributes {dimension_semantics = [#tpu.dimension_semantics<parallel>, #tpu.dimension_semantics<arbitrary>], iteration_bounds = array<i64: 2, 1>, scalar_prefetch = 0 : i64, scratch_operands = 0 : i64, tpu.core_type = #tpu.core_type<tc>, window_params = [{transform_indices = @transform_0, window_bounds = array<i64: 64, 128>}, {transform_indices = @transform_1, window_bounds = array<i64: 128, 128>}, {pipeline_mode = #tpu.pipeline_mode<synchronous>, transform_indices = @transform_2, window_bounds = array<i64: 1, 128>}, {transform_indices = @transform_3, window_bounds = array<i64: 64, 128>}]} {
    %c0 = arith.constant 0 : index
    %c0_0 = arith.constant 0 : index
    %0 = vector.load %arg2[%c0, %c0_0] : memref<64x128xbf16, #tpu.memory_space<vmem>>, vector<64x128xbf16>
    %c0_1 = arith.constant 0 : index
    %c0_2 = arith.constant 0 : index
    %1 = vector.load %arg3[%c0_1, %c0_2] : memref<128x128xbf16, #tpu.memory_space<vmem>>, vector<128x128xbf16>
    %cst = arith.constant dense<0.000000e+00> : vector<64x128xf32>
    %2 = tpu.matmul %0, %1, %cst {dimension_numbers = #tpu.dot_dimension_numbers<[1], [0], [0], [1], [0, 0, 1, 1], [], []>} : vector<64x128xbf16>, vector<128x128xbf16>, vector<64x128xf32> -> vector<64x128xf32>
    %c0_3 = arith.constant 0 : index
    %c0_4 = arith.constant 0 : index
    %3 = vector.load %arg4[%c0_3, %c0_4] : memref<1x128xf32, #tpu.memory_space<vmem>>, vector<1x128xf32>
    %4 = vector.broadcast %3 : vector<1x128xf32> to vector<64x128xf32>
    %5 = arith.addf %2, %4 : vector<64x128xf32>
    %cst_5 = arith.constant 0.000000e+00 : f32
    %6 = vector.broadcast %cst_5 : f32 to vector<64x128xf32>
    %7 = arith.maximumf %5, %6 : vector<64x128xf32>
    %8 = arith.truncf %7 : vector<64x128xf32> to vector<64x128xbf16>
    %c0_6 = arith.constant 0 : index
    %c0_7 = arith.constant 0 : index
    %9 = vector.load %arg5[%c0_6, %c0_7] : memref<64x128xbf16, #tpu.memory_space<vmem>>, vector<64x128xbf16>
    tpu.vector_store %arg5[%c0_6, %c0_7], %8 {strides = array<i32>} : memref<64x128xbf16, #tpu.memory_space<vmem>>, vector<64x128xbf16>,
    return
  }
  func.func @transform_0(%arg0: i32, %arg1: i32) -> (i32, i32) {
    %c0_i32 = arith.constant 0 : i32
    return %arg0, %arg1 : i32, i32
  }
  func.func @transform_1(%arg0: i32, %arg1: i32) -> (i32, i32) {
    %c0_i32 = arith.constant 0 : i32
    %c0_i32_0 = arith.constant 0 : i32
    return %arg1, %c0_i32 : i32, i32
  }
  func.func @transform_2(%arg0: i32, %arg1: i32) -> (i32, i32) {
    %c0_i32 = arith.constant 0 : i32
    %c0_i32_0 = arith.constant 0 : i32
    %c0_i32_1 = arith.constant 0 : i32
    return %c0_i32, %c0_i32_0 : i32, i32
  }
  func.func @transform_3(%arg0: i32, %arg1: i32) -> (i32, i32) {
    %c0_i32 = arith.constant 0 : i32
    %c0_i32_0 = arith.constant 0 : i32
    return %arg0, %c0_i32 : i32, i32
  }
}

</mosaic_0001>

<bundles_post_ra>
// kernel: basic_block_forward_nhwc.2
= control target key start
LH: loop header
LB: loop body
LE: loop exit
PB: predicated region body
PF: predicated region fallthrough
CT: control target
= control target key end

     0   :  { %s715_s12 = smov 0   ;;  %s717_s13 = smov 0   ;;  %s788_s0 = inlined_call_operand.vmem [shape: bf16[128,128], index: 0, kind: input, shape index: {}]   ;;  %s789_s1 = inlined_call_operand.vmem [shape: bf16[128,128], index: 1, kind: input, shape index: {}]   ;;  %s790_s2 = inlined_call_operand.vmem [shape: f32[1,128], index: 2, kind: input, shape index: {}]   ;;  %s791_s3 = inlined_call_operand.vmem [shape: bf16[128,128], index: 3, kind: output, shape index: {}]  }
   0x1   :  { %s719_s14 = smov 0  }
   0x2 LB: > { %s25_s15 = sadd.s32 1, %s689_s13  ;;  %p524_p0 = scmp.ge.s32.totalorder %s693_s14, 1  ;;  %s693_s14 = sphi %s719_s14, %s13_s14   ;;  %s689_s13 = sphi %s717_s13, %s793_s13   ;;  %s685_s12 = sphi %s715_s12, %s792_s12  }
   0x3   : > { %p27_p1 = scmp.ge.s32.totalorder %s25_s15, 2  ;;  %p166_p2 = scmp.lt.s32.totalorder %s693_s14, 3 }
   0x5   : > { %s795_s15 = smov (%p27_p1, %s25_s15), 0  ;;  %p167_p3 = pnand %p524_p0, %p166_p2 }
   0x6   : > { %s525_s18 = sshll.u32 (!%p167_p3), %s685_s12, 3 }
   0x7   : > { %170 = sbr.rel (%p167_p3) target bundleno = 251 (0xfb), region = 32  ;;  %p199_p4 = scmp.lt.s32.totalorder (!%p167_p3), %s525_s18, 15 }
   0xc   : > { %v659_v0 = vld [vmem:[%s789_s1 + $0x38] sm:$0xff]   ;;  %v660_v1 = vld [vmem:[%s789_s1 + $0x30] sm:$0xff]   ;;  %s797_s18 = smov (!%p199_p4, %s525_s18), 15  ;;  %v661_v2 = vld [vmem:[%s789_s1 + $0x28] sm:$0xff]  }
   0xd   : > { %595 = vmatprep.subr.bf16.mxu0 %v659_v0  ;;  %619 = vmatprep.subr.bf16.mxu1 %v659_v0  ;;  %s526_s23 = sshll.u32 %s797_s18, 2  ;;  %v662_v3 = vld [vmem:[%s789_s1 + $0x20] sm:$0xff]   ;;  %v663_v6 = vld [vmem:[%s789_s1 + $0x18] sm:$0xff]   ;;  %v664_v7 = vld [vmem:[%s789_s1 + $0x10] sm:$0xff]  }
   0xe   : > { %596 = vmatpush3.bf16.msra.mxu0 %v659_v0  ;;  %627 = vmatpush3.bf16.msra.mxu1 %v659_v0  ;;  %s750_s26 = scalar_lea.vmem %s788_s0, %s526_s23  ;;  %v665_v8 = vld [vmem:[%s789_s1 + $0x8] sm:$0xff]   ;;  %v666_v9 = vld [vmem:[%s789_s1] sm:$0xff]   ;;  %s217_s17 = scalar_lea.vmem %s791_s3, %s526_s23 }
   0xf   : > { %597 = vmatprep.subr.bf16.mxu0 %v660_v1  ;;  %620 = vmatprep.subr.bf16.mxu1 %v660_v1  ;;  %v667_v4 = vld [vmem:[%s750_s26] sm:$0xff]   ;;  %v668_v5 = vld [vmem:[%s750_s26 + $0x10] sm:$0xff]   ;;  %v669_v10 = vld [vmem:[%s750_s26 + $0x8] sm:$0xff]  }
  0x10   : > { %611 = vmatprep.mubr.bf16.mxu0 %v667_v4  ;;  %615 = vmatprep.mubr.bf16.mxu1 %v668_v5  ;;  %v670_v11 = vld [vmem:[%s750_s26 + $0x18] sm:$0xff]   ;;  %v529_v12 = vld [vmem:[%s790_s2] ss:$0 sm:$0xff] }
  0x12   : > { %598 = vmatpush3.bf16.msra.mxu0 %v660_v1  ;;  %628 = vmatpush3.bf16.msra.mxu1 %v660_v1 }
  0x13   : > { %599 = vmatprep.subr.bf16.mxu0 %v661_v2  ;;  %621 = vmatprep.subr.bf16.mxu1 %v661_v2 }
  0x16   : > { %600 = vmatpush3.bf16.msra.mxu0 %v661_v2  ;;  %629 = vmatpush3.bf16.msra.mxu1 %v661_v2 }
  0x17   : > { %601 = vmatprep.subr.bf16.mxu0 %v662_v3  ;;  %622 = vmatprep.subr.bf16.mxu1 %v662_v3 }
  0x1a   : > { %602 = vmatpush3.bf16.msra.mxu0 %v662_v3  ;;  %630 = vmatpush3.bf16.msra.mxu1 %v662_v3 }
  0x1b   : > { %603 = vmatprep.subr.bf16.mxu0 %v663_v6  ;;  %623 = vmatprep.subr.bf16.mxu1 %v663_v6 }
  0x1e   : > { %604 = vmatpush3.bf16.msra.mxu0 %v663_v6  ;;  %631 = vmatpush3.bf16.msra.mxu1 %v663_v6 }
  0x1f   : > { %605 = vmatprep.subr.bf16.mxu0 %v664_v7  ;;  %624 = vmatprep.subr.bf16.mxu1 %v664_v7 }
  0x22   : > { %606 = vmatpush3.bf16.msra.mxu0 %v664_v7  ;;  %632 = vmatpush3.bf16.msra.mxu1 %v664_v7 }
  0x23   : > { %607 = vmatprep.subr.bf16.mxu0 %v665_v8  ;;  %625 = vmatprep.subr.bf16.mxu1 %v665_v8 }
  0x26   : > { %608 = vmatpush3.bf16.msra.mxu0 %v665_v8  ;;  %633 = vmatpush3.bf16.msra.mxu1 %v665_v8 }
  0x27   : > { %609 = vmatprep.subr.bf16.mxu0 %v666_v9  ;;  %626 = vmatprep.subr.bf16.mxu1 %v666_v9 }
  0x2a   : > { %610 = vmatpush3.bf16.msra.mxu0 %v666_v9  ;;  %634 = vmatpush3.bf16.msra.mxu1 %v666_v9 }
  0x2d   : > { %612 = vmatmul.mubr.bf16.vlgmr.msra.gmra.mxu0 %v669_v10  ;;  %616 = vmatmul.mubr.bf16.vlgmr.msra.gmra.mxu1 %v670_v11 }
  0xed   : > { %v613_v13 = vpop.f32.mrf.mxu0  ;;  %v617_v14 = vpop.f32.mrf.mxu1 }
  0xee   : > { %v366_v15 = vadd.f32 %v613_v13, %v529_v12  ;;  %v382_v16 = vadd.f32 %v617_v14, %v529_v12 }
  0xef   : > { %v357_v17 = vpop.f32.mrf.mxu0  ;;  %v373_v18 = vpop.f32.mrf.mxu1 }
  0xf0   : > { %v358_v19 = vadd.f32 %v529_v12, %v357_v17  ;;  %v374_v20 = vadd.f32 %v529_v12, %v373_v18  ;;  %v390_v25 = vmax.f32 %v366_v15, 0.0  ;;  %v394_v26 = vmax.f32 %v382_v16, 0.0 }
  0xf1   : > { %v614_v21 = vpop.f32.mrf.mxu0  ;;  %v618_v22 = vpop.f32.mrf.mxu1 }
  0xf2   : > { %v369_v23 = vadd.f32 %v614_v21, %v529_v12  ;;  %v385_v24 = vadd.f32 %v618_v22, %v529_v12  ;;  %v388_v33 = vmax.f32 %v358_v19, 0.0  ;;  %v392_v34 = vmax.f32 %v374_v20, 0.0 }
  0xf3   : > { %v360_v27 = vpop.f32.mrf.mxu0  ;;  %v376_v28 = vpop.f32.mrf.mxu1 }
  0xf4   : > { %v391_v29 = vmax.f32 %v369_v23, 0.0  ;;  %v395_v30 = vmax.f32 %v385_v24, 0.0  ;;  %v361_v31 = vadd.f32 %v529_v12, %v360_v27  ;;  %v377_v32 = vadd.f32 %v529_v12, %v376_v28 }
  0xf6   : > { %v568_v35 = vpack.c.bf16 %v391_v29, %v390_v25  ;;  %v578_v36 = vpack.c.bf16 %v395_v30, %v394_v26  ;;  %v389_v37 = vmax.f32 %v361_v31, 0.0  ;;  %v393_v38 = vmax.f32 %v377_v32, 0.0 }
  0xf8   : > { %580 = vst [vmem:[%s217_s17 + $0x8] sm:$0xff] %v568_v35   ;;  %582 = vst [vmem:[%s217_s17 + $0x18] sm:$0xff] %v578_v36   ;;  %v563_v39 = vpack.c.bf16 %v389_v37, %v388_v33  ;;  %v573_v40 = vpack.c.bf16 %v393_v38, %v392_v34 }
  0xfa   : > { %564 = vst [vmem:[%s217_s17] sm:$0xff] %v563_v39   ;;  %581 = vst [vmem:[%s217_s17 + $0x10] sm:$0xff] %v573_v40  }
  0xfb PF: > { %s13_s14 = sadd.s32 1, %s693_s14   ;;  %s792_s12 = smov %s689_s13 }
  0xfc   : > { %p10_p5 = scmp.ge.s32.totalorder %s13_s14, 4   ;;  %s793_s13 = smov %s795_s15 }
  0xfe   :  { %12 = sbr.rel (!%p10_p5) target bundleno = 2 (0x2), region = 65 }

// kernel: basic_block_forward_nhwc.3
= control target key start
LH: loop header
LB: loop body
LE: loop exit
PB: predicated region body
PF: predicated region fallthrough
CT: control target
= control target key end

     0   :  { %8 = vsyncpa [#allocation3], 0  ;;  %s975_s0 = inlined_call_operand.vmem [shape: bf16[128,128], index: 0, kind: input, shape index: {}]   ;;  %s976_s1 = inlined_call_operand.vmem [shape: bf16[128,128], index: 1, kind: input, shape index: {}]   ;;  %s977_s2 = inlined_call_operand.vmem [shape: f32[1,128], index: 2, kind: input, shape index: {}]   ;;  %s978_s3 = inlined_call_operand.hbm [shape: bf16[128,128], index: 3, kind: output, shape index: {}]  }
   0x1   :  { %10 = vsyncpa [#allocation3 + $0x1], 0  ;;  %s825_s12 = smov 0   ;;  %s827_s13 = smov 0  }
   0x2   :  { %s829_s14 = smov 0   ;;  %s831_s15 = smov 0  }
   0x3   :  { %s833_s16 = smov 0   ;;  %s835_s17 = smov 0  }
   0x4 LB: > { %s536_s18 = sadd.s32 4294967295, %s800_s17   ;;  %s537_s19 = sadd.s32 4294967294, %s800_s17   ;;  %s800_s17 = sphi %s835_s17, %s16_s17   ;;  %s796_s16 = sphi %s833_s16, %s985_s16   ;;  %s792_s15 = sphi %s831_s15, %s984_s15   ;;  %s788_s14 = sphi %s829_s14, %s983_s14   ;;  %s784_s13 = sphi %s827_s13, %s982_s13   ;;  %s780_s12 = sphi %s825_s12, %s981_s12  }
   0x5   : > { %s28_s20 = sadd.s32 1, %s796_s16  ;;  %s110_s21 = sadd.s32 1, %s788_s14 }
   0x6   : > { %p30_p0 = scmp.ge.s32.totalorder %s28_s20, 2  ;;  %p120_p1 = scmp.ne.s32.totalorder %s788_s14, %s784_s13 }
   0x7   : > { %p121_p2 = scmp.eq.s32.totalorder %s536_s18, 1  ;;  %p126_p3 = scmp.ne.s32.totalorder %s784_s13, %s780_s12 }
   0x8   : > { %s987_s20 = smov (%p30_p0, %s28_s20), 0  ;;  %p127_p5 = scmp.eq.s32.totalorder %s537_s19, 1 }
   0x9   : > { %p865_p4 = por %p121_p2, %p120_p1  ;;  %s107_s23 = ssub.s32 %s796_s16, %s987_s20 }
   0xa   : > { %p541_p6 = scmp.ge.s32.totalorder %s800_s17, 1  ;;  %p108_p7 = scmp.eq.s32.totalorder %s107_s23, 0 }
   0xb   : > { %p872_p8 = por %p127_p5, %p126_p3  ;;  %p169_p9 = scmp.lt.s32.totalorder %s800_s17, 3 }
   0xc   : > { %s878_s25 = scalar_select %p108_p7, %s788_s14, %s110_s21  }
   0xd   : > { %p170_p10 = pnand %p541_p6, %p169_p9 }
   0xe   : > { %s543_s28 = sshll.u32 (!%p170_p10), %s792_s15, 3  ;;  %s198_s30 = sand.u32 (!%p170_p10), 1, %s784_s13  }
   0xf   : > { %173 = sbr.rel (%p170_p10) target bundleno = 272 (0x110), region = 32  ;;  %p202_p11 = scmp.lt.s32.totalorder (!%p170_p10), %s543_s28, 15 }
  0x10   : > { %s802_s21 = smov (!%p170_p10), [#allocation2]  }
  0x11   : > { %s728_s23 = sshll.u32 (!%p170_p10), %s802_s21, 4  ;;  %s729_s23 = int_to_ptr.vmem [resolvable:$false] %s728_s23 }
  0x12   : > { %s730_s26 = scalar_lea.vmem (!%p170_p10), %s729_s23, 1024 }
  0x14   : > { %v712_v0 = vld [vmem:[%s976_s1 + $0x38] sm:$0xff]   ;;  %v713_v1 = vld [vmem:[%s976_s1 + $0x30] sm:$0xff]   ;;  %s989_s28 = smov (!%p202_p11, %s543_s28), 15  ;;  %v714_v2 = vld [vmem:[%s976_s1 + $0x28] sm:$0xff]  }
  0x15   : > { %615 = vmatprep.subr.bf16.mxu0 %v712_v0  ;;  %639 = vmatprep.subr.bf16.mxu1 %v712_v0  ;;  %s544_s6 = sshll.u32 %s989_s28, 2  ;;  %v715_v3 = vld [vmem:[%s976_s1 + $0x20] sm:$0xff]   ;;  %v716_v6 = vld [vmem:[%s976_s1 + $0x18] sm:$0xff]   ;;  %v717_v7 = vld [vmem:[%s976_s1 + $0x10] sm:$0xff]  }
  0x16   : > { %616 = vmatpush3.bf16.msra.mxu0 %v712_v0  ;;  %647 = vmatpush3.bf16.msra.mxu1 %v712_v0  ;;  %s893_s9 = scalar_lea.vmem %s975_s0, %s544_s6  ;;  %v718_v8 = vld [vmem:[%s976_s1 + $0x8] sm:$0xff]   ;;  %v719_v9 = vld [vmem:[%s976_s1] sm:$0xff]   ;;  %s542_s6 = sshll.u32 %s198_s30, 5 }
  0x17   : > { %617 = vmatprep.subr.bf16.mxu0 %v713_v1  ;;  %640 = vmatprep.subr.bf16.mxu1 %v713_v1  ;;  %v720_v4 = vld [vmem:[%s893_s9] sm:$0xff]   ;;  %v721_v5 = vld [vmem:[%s893_s9 + $0x10] sm:$0xff]   ;;  %v722_v10 = vld [vmem:[%s893_s9 + $0x8] sm:$0xff]   ;;  %s200_s7 = scalar_lea.vmem [#allocation2], %s542_s6 }
  0x18   : > { %631 = vmatprep.mubr.bf16.mxu0 %v720_v4  ;;  %635 = vmatprep.mubr.bf16.mxu1 %v721_v5  ;;  %v723_v11 = vld [vmem:[%s893_s9 + $0x18] sm:$0xff]   ;;  %v545_v12 = vld [vmem:[%s977_s2] ss:$0 sm:$0xff]  ;;  %s448_s8 = sshll.u32 %s200_s7, 4  ;;  %s579_s9 = sshll.u32 %s792_s15, 9  ;;  %s921_s8 = int_to_ptr.vmem [resolvable:$true] %s448_s8 }
  0x19   : > { %s926_s18 = scalar_lea.hbm %s978_s3, %s579_s9  ;;  %s930_s15 = scalar_lea.sflag [#allocation3], %s198_s30 }
  0x1a   : > { %618 = vmatpush3.bf16.msra.mxu0 %v713_v1  ;;  %648 = vmatpush3.bf16.msra.mxu1 %v713_v1  ;;  %s724_s19 = scalar_lea.vmem %s921_s8, 512  ;;  %p731_p1 = scmp.lt.s32.totalorder %s921_s8, %s729_s23 }
  0x1b   : > { %619 = vmatprep.subr.bf16.mxu0 %v714_v2  ;;  %641 = vmatprep.subr.bf16.mxu1 %v714_v2  ;;  %p725_p12 = scmp.ne.s32.totalorder %s921_s8, %s724_s19  ;;  %p732_p2 = scmp.lt.s32.totalorder %s730_s26, %s724_s19 }
  0x1d   : > { %p726_p13 = pnand %p725_p12, %p865_p4  ;;  %p733_p3 = por %p732_p2, %p731_p1 }
  0x1e   : > { %620 = vmatpush3.bf16.msra.mxu0 %v714_v2  ;;  %649 = vmatpush3.bf16.msra.mxu1 %v714_v2 }
  0x1f   : > { %621 = vmatprep.subr.bf16.mxu0 %v715_v3  ;;  %642 = vmatprep.subr.bf16.mxu1 %v715_v3  ;;  %p727_p0 = pneg %p726_p13 }
  0x21   : > { %p734_p5 = pnand %p733_p3, %p727_p0 }
  0x22   : > { %622 = vmatpush3.bf16.msra.mxu0 %v715_v3  ;;  %650 = vmatpush3.bf16.msra.mxu1 %v715_v3 }
  0x23   : > { %623 = vmatprep.subr.bf16.mxu0 %v716_v6  ;;  %643 = vmatprep.subr.bf16.mxu1 %v716_v6 }
  0x26   : > { %624 = vmatpush3.bf16.msra.mxu0 %v716_v6  ;;  %651 = vmatpush3.bf16.msra.mxu1 %v716_v6 }
  0x27   : > { %625 = vmatprep.subr.bf16.mxu0 %v717_v7  ;;  %644 = vmatprep.subr.bf16.mxu1 %v717_v7 }
  0x2a   : > { %626 = vmatpush3.bf16.msra.mxu0 %v717_v7  ;;  %652 = vmatpush3.bf16.msra.mxu1 %v717_v7 }
  0x2b   : > { %627 = vmatprep.subr.bf16.mxu0 %v718_v8  ;;  %645 = vmatprep.subr.bf16.mxu1 %v718_v8 }
  0x2e   : > { %628 = vmatpush3.bf16.msra.mxu0 %v718_v8  ;;  %653 = vmatpush3.bf16.msra.mxu1 %v718_v8 }
  0x2f   : > { %629 = vmatprep.subr.bf16.mxu0 %v719_v9  ;;  %646 = vmatprep.subr.bf16.mxu1 %v719_v9 }
  0x32   : > { %630 = vmatpush3.bf16.msra.mxu0 %v719_v9  ;;  %654 = vmatpush3.bf16.msra.mxu1 %v719_v9 }
  0x35   : > { %632 = vmatmul.mubr.bf16.vlgmr.msra.gmra.mxu0 %v722_v10  ;;  %636 = vmatmul.mubr.bf16.vlgmr.msra.gmra.mxu1 %v723_v11 }
  0xf5   : > { %v633_v13 = vpop.f32.mrf.mxu0  ;;  %v637_v14 = vpop.f32.mrf.mxu1 }
  0xf6   : > { %v364_v15 = vadd.f32 %v633_v13, %v545_v12  ;;  %v380_v16 = vadd.f32 %v637_v14, %v545_v12 }
  0xf7   : > { %v355_v17 = vpop.f32.mrf.mxu0  ;;  %v371_v18 = vpop.f32.mrf.mxu1 }
  0xf8   : > { %v356_v19 = vadd.f32 %v545_v12, %v355_v17  ;;  %v372_v20 = vadd.f32 %v545_v12, %v371_v18  ;;  %v388_v25 = vmax.f32 %v364_v15, 0.0  ;;  %v392_v26 = vmax.f32 %v380_v16, 0.0 }
  0xf9   : > { %v634_v21 = vpop.f32.mrf.mxu0  ;;  %v638_v22 = vpop.f32.mrf.mxu1 }
  0xfa   : > { %v367_v23 = vadd.f32 %v634_v21, %v545_v12  ;;  %v383_v24 = vadd.f32 %v638_v22, %v545_v12  ;;  %v386_v33 = vmax.f32 %v356_v19, 0.0  ;;  %v390_v34 = vmax.f32 %v372_v20, 0.0 }
  0xfb   : > { %v358_v27 = vpop.f32.mrf.mxu0  ;;  %v374_v28 = vpop.f32.mrf.mxu1 }
  0xfc   : > { %v389_v29 = vmax.f32 %v367_v23, 0.0  ;;  %v393_v30 = vmax.f32 %v383_v24, 0.0  ;;  %v359_v31 = vadd.f32 %v545_v12, %v358_v27  ;;  %v375_v32 = vadd.f32 %v545_v12, %v374_v28 }
  0xfe   : > { %v588_v35 = vpack.c.bf16 %v389_v29, %v388_v25  ;;  %v598_v36 = vpack.c.bf16 %v393_v30, %v392_v26  ;;  %v387_v37 = vmax.f32 %v359_v31, 0.0  ;;  %v391_v38 = vmax.f32 %v375_v32, 0.0 }
 0x100   : > { %600 = vst [vmem:[%s200_s7 + $0x8] sm:$0xff] %v588_v35   ;;  %602 = vst [vmem:[%s200_s7 + $0x18] sm:$0xff] %v598_v36   ;;  %v583_v39 = vpack.c.bf16 %v387_v37, %v386_v33  ;;  %v593_v40 = vpack.c.bf16 %v391_v38, %v390_v34 }
 0x102   : > { %584 = vst [vmem:[%s200_s7] sm:$0xff] %v583_v39   ;;  %601 = vst [vmem:[%s200_s7 + $0x10] sm:$0xff] %v593_v40  }
 0x103   : > { %737 = shalt.err (!%p734_p5)
}
 0x104   : > { %s738_s27 = scalar_lea.hbm %s926_s18, 512  ;;  %s742_s30 = scalar_lea.hbm %s978_s3, 1024 }
 0x105   : > { %p739_p6 = scmp.ne.s32.totalorder %s926_s18, %s738_s27  ;;  %p743_p10 = scmp.lt.s32.totalorder %s926_s18, %s978_s3 }
 0x106   : > { %p744_p11 = scmp.lt.s32.totalorder %s742_s30, %s738_s27 }
 0x107   : > { %p740_p7 = pnand %p739_p6, %p865_p4 }
 0x108   : > { %p745_p12 = por %p744_p11, %p743_p10 }
 0x109   : > { %p741_p9 = pneg %p740_p7 }
 0x10b   : > { %p746_p13 = pnand %p745_p12, %p741_p9 }
 0x10d   : > { %749 = shalt.err (!%p746_p13)
}
 0x10e   : > { %s803_s6 = smov 64   ;;  %s804_s7 = smov 4  }
 0x10f   : > { %655 = dma.vmem_to_hbm [thread:$0]  (%p865_p4), %s921_s8, 512, %s926_s18, %s930_s15, %s803_s6, %s803_s6, %s804_s7  }
 0x110 PF: > { %p661_p0 = scmp.ge.s32.totalorder %s800_s17, 2  ;;  %s463_s9 = sand.u32 1, %s780_s12  }
 0x111   : > { %s464_s10 = scalar_lea.sflag [#allocation3], %s463_s9 }
 0x112   : > { %p658_p1 = pnand %p661_p0, %p872_p8 }
 0x114   : > { %p659_p2 = pneg %p658_p1 }
 0x116   : > { %775 = dma.done.wait (%p659_p2), %s464_s10, 512  }
 0x117   : > { %777 = vsyncadd (%p659_p2), %s464_s10, 4294966784  ;;  %s16_s17 = sadd.s32 1, %s800_s17   ;;  %s981_s12 = smov %s784_s13 }
 0x118   : > { %p13_p3 = scmp.ge.s32.totalorder %s16_s17, 4   ;;  %s982_s13 = smov %s788_s14 }
 0x119   : > { %s983_s14 = smov %s878_s25  ;;  %s984_s15 = smov %s796_s16 }
 0x11a   : > { %s985_s16 = smov %s987_s20  ;;  %15 = sbr.rel (!%p13_p3) target bundleno = 4 (0x4), region = 70 }
 0x11f   :  { %469 = vsyncpa [#allocation3], 1 }
 0x120   :  { %471 = vsyncpa [#allocation3 + $0x1], 1 }

</bundles_post_ra>
